<compile_context>
chip_gen: v6e
topology: v6e:2x2x1
jax: 0.10.0
libtpu: 0.0.40
codegen_flags: <defaults>
</compile_context>

<pallas_src>
import functools

import jax
import jax.numpy as jnp
from jax.experimental import pallas as pl
from jax.experimental.pallas import tpu as pltpu

BN_EPS = 1e-5
COMPUTE_DTYPE = jnp.bfloat16  # MXU operand dtype; all BN math stays f32.


def _round_up(x, m):
    return (x + m - 1) // m * m


# ---------------------------------------------------------------------------
# Pass 1: ReLU + conv-as-matmul + streaming BN statistics.
# ---------------------------------------------------------------------------
def _conv_stats_kernel(p_ref, w_ref, gamma_ref, beta_ref,
                       y_ref, scale_ref, shift_ref,
                       sum_acc, sq_acc, *, m_valid, eps):
    i = pl.program_id(0)

    @pl.when(i == 0)
    def _():
        sum_acc[...] = jnp.zeros_like(sum_acc)
        sq_acc[...] = jnp.zeros_like(sq_acc)

    # ReLU on the patch tile (padding zeros are unchanged by ReLU, so applying
    # it to the patches is equivalent to applying it to x).
    p = jnp.maximum(p_ref[...], 0)                                 # (K, TM) bf16
    # Conv as matmul on the MXU: bf16 operands, f32 accumulation.
    y = jnp.dot(w_ref[...], p, preferred_element_type=jnp.float32)  # (Cp, TM) f32
    y_ref[...] = y

    # Streaming BN stats (sum / sum-of-squares); zero-padded M columns add 0.
    sum_acc[...] += jnp.sum(y, axis=1, keepdims=True)
    sq_acc[...] += jnp.sum(y * y, axis=1, keepdims=True)

    @pl.when(i == pl.num_programs(0) - 1)
    def _():
        inv_m = 1.0 / m_valid
        mean = sum_acc[...] * inv_m
        var = sq_acc[...] * inv_m - mean * mean
        var = jnp.maximum(var, 0.0)                  # guard fp cancellation
        inv_std = jax.lax.rsqrt(var + eps)
        scale = gamma_ref[...] * inv_std
        shift = beta_ref[...] - mean * scale
        scale_ref[...] = scale
        shift_ref[...] = shift


# ---------------------------------------------------------------------------
# Pass 2: apply folded BN (one FMA per element), lane-dense output.
# ---------------------------------------------------------------------------
def _bn_apply_kernel(y_ref, scale_ref, shift_ref, o_ref):
    o_ref[...] = (y_ref[...] * scale_ref[...] + shift_ref[...]).astype(o_ref.dtype)


# ---------------------------------------------------------------------------
# Patch-matrix construction.
# ---------------------------------------------------------------------------
def _im2col(x, kh, kw, stride, padding, h_out, w_out):
    """x: (N, C, H, W) -> (K, M) with K=C*kh*kw, M=N*Hout*Wout."""
    n, c, _, _ = x.shape
    xp = jnp.pad(x, ((0, 0), (0, 0), (padding, padding), (padding, padding)))
    cols = []
    for i in range(kh):
        for j in range(kw):
            cols.append(
                xp[:, :, i:i + stride * h_out:stride, j:j + stride * w_out:stride])
    pat = jnp.stack(cols, axis=2)                         # (N, C, kh*kw, Ho, Wo)
    pat = pat.reshape(n, c * kh * kw, h_out * w_out)
    return pat.transpose(1, 0, 2).reshape(c * kh * kw, n * h_out * w_out)


@functools.partial(jax.jit,
                   static_argnames=("kernel_size", "stride", "padding", "block_m"))
def relu_conv_bn(x, weight, gamma, beta, *, kernel_size, stride, padding,
                 block_m=None):
    """x: (N, C_in, H, W) NCHW; weight: (C_out, C_in, kh, kw) OIHW."""
    n, c_in, h, w = x.shape
    c_out = weight.shape[0]
    kh = kw = kernel_size
    h_out = (h + 2 * padding - kh) // stride + 1
    w_out = (w + 2 * padding - kw) // stride + 1
    m = n * h_out * w_out
    k = c_in * kh * kw

    # ---- build (K, M) patch matrix in the MXU operand dtype ----------------
    xc = x.astype(COMPUTE_DTYPE)
    if kh == 1 and kw == 1:
        # 1x1 conv: pure strided slice + layout change, no im2col inflation.
        xs = xc
        if padding:
            xs = jnp.pad(xs, ((0, 0), (0, 0), (padding, padding), (padding, padding)))
        if stride != 1:
            xs = xs[:, :, ::stride, ::stride]
        xs = xs[:, :, :h_out, :w_out]
        patches = xs.transpose(1, 0, 2, 3).reshape(c_in, m)
    else:
        # TODO(synk): for kh*kw>1, loop the taps inside the kernel on shifted
        # NCHW slices instead of materialising im2col (kh*kw x HBM traffic).
        patches = _im2col(xc, kh, kw, stride, padding, h_out, w_out)

    # ---- pad to hardware-friendly shapes ------------------------------------
    sub = 16 if COMPUTE_DTYPE == jnp.bfloat16 else 8
    k_pad = _round_up(k, sub)
    c_out_pad = _round_up(c_out, 8)

    # Tile the M axis; auto-shrink against an explicit VMEM budget (v7x: 64 MiB
    # physical / 32 MiB default scoped).
    tm = block_m if block_m is not None else min(1024, _round_up(m, 128))
    tm = max(128, _round_up(tm, 128))
    p_itemsize = patches.dtype.itemsize

    def _tile_bytes(t):
        return (2 * (k_pad * t * p_itemsize            # double-buffered P tile
                     + c_out_pad * t * 4)              # double-buffered y tile
                + c_out_pad * k_pad * p_itemsize       # resident weight
                + 8 * c_out_pad * 4)                   # gamma/beta/stats/scratch

    vmem_budget = 24 * 1024 * 1024
    while tm > 128 and _tile_bytes(tm) > vmem_budget:
        tm //= 2
    m_pad = _round_up(m, tm)
    num_tiles = m_pad // tm

    patches = jnp.pad(patches, ((0, k_pad - k), (0, m_pad - m)))
    w2d = weight.reshape(c_out, k).astype(COMPUTE_DTYPE)
    w2d = jnp.pad(w2d, ((0, c_out_pad - c_out), (0, k_pad - k)))
    gamma2 = jnp.pad(gamma.astype(jnp.float32).reshape(c_out, 1),
                     ((0, c_out_pad - c_out), (0, 0)))
    beta2 = jnp.pad(beta.astype(jnp.float32).reshape(c_out, 1),
                    ((0, c_out_pad - c_out), (0, 0)))

    vmem_limit = 32 * 1024 * 1024

    # ---- pass 1: conv + streaming BN stats (reduction over M tiles) ---------
    kernel1 = functools.partial(_conv_stats_kernel, m_valid=float(m), eps=BN_EPS)
    y, scale, shift = pl.pallas_call(
        kernel1,
        out_shape=(
            jax.ShapeDtypeStruct((c_out_pad, m_pad), jnp.float32),
            jax.ShapeDtypeStruct((c_out_pad, 1), jnp.float32),
            jax.ShapeDtypeStruct((c_out_pad, 1), jnp.float32),
        ),
        grid=(num_tiles,),
        in_specs=[
            pl.BlockSpec((k_pad, tm), lambda i: (0, i)),
            pl.BlockSpec((c_out_pad, k_pad), lambda i: (0, 0)),
            pl.BlockSpec((c_out_pad, 1), lambda i: (0, 0)),
            pl.BlockSpec((c_out_pad, 1), lambda i: (0, 0)),
        ],
        out_specs=(
            pl.BlockSpec((c_out_pad, tm), lambda i: (0, i)),
            pl.BlockSpec((c_out_pad, 1), lambda i: (0, 0)),
            pl.BlockSpec((c_out_pad, 1), lambda i: (0, 0)),
        ),
        scratch_shapes=[
            pltpu.VMEM((c_out_pad, 1), jnp.float32),
            pltpu.VMEM((c_out_pad, 1), jnp.float32),
        ],
        compiler_params=pltpu.CompilerParams(
            dimension_semantics=("arbitrary",),
            vmem_limit_bytes=vmem_limit,
        ),
    )(patches, w2d, gamma2, beta2)

    # ---- pass 2: apply folded BN; no cross-tile state -> parallel axis ------
    out_flat = pl.pallas_call(
        _bn_apply_kernel,
        out_shape=jax.ShapeDtypeStruct((c_out_pad, m_pad), x.dtype),
        grid=(num_tiles,),
        in_specs=[
            pl.BlockSpec((c_out_pad, tm), lambda i: (0, i)),
            pl.BlockSpec((c_out_pad, 1), lambda i: (0, 0)),
            pl.BlockSpec((c_out_pad, 1), lambda i: (0, 0)),
        ],
        out_specs=pl.BlockSpec((c_out_pad, tm), lambda i: (0, i)),
        compiler_params=pltpu.CompilerParams(
            dimension_semantics=("parallel",),
            vmem_limit_bytes=vmem_limit,
        ),
    )(y, scale, shift)

    # (C_out, N*Hout*Wout) -> (N, C_out, Hout, Wout) to match the PyTorch
    # module's NCHW output.  A NHWC consumer could skip this transpose.
    out = out_flat[:c_out, :m].reshape(c_out, n, h_out, w_out)
    return out.transpose(1, 0, 2, 3)


# ---------------------------------------------------------------------------
# References.
# ---------------------------------------------------------------------------
def _reference_f32(x, weight, gamma, beta, *, stride, padding):
    """Pure f32 reference matching PyTorch ReLUConvBN in training mode."""
    rx = jnp.maximum(x, 0.0)
    conv = jax.lax.conv_general_dilated(
        rx, weight, (stride, stride),
        [(padding, padding), (padding, padding)],
        dimension_numbers=("NCHW", "OIHW", "NCHW"))
    mean = conv.mean(axis=(0, 2, 3), keepdims=True)
    var = conv.var(axis=(0, 2, 3), keepdims=True)  # biased, as BN uses
    norm = (conv - mean) * jax.lax.rsqrt(var + BN_EPS)
    return norm * gamma.reshape(1, -1, 1, 1) + beta.reshape(1, -1, 1, 1)


def _reference_matched(x, weight, gamma, beta, *, stride, padding):
    """Same math, but with bf16 matmul operands (matches kernel MXU dtype)."""
    rx = jnp.maximum(x, 0.0).astype(COMPUTE_DTYPE)
    conv = jax.lax.conv_general_dilated(
        rx, weight.astype(COMPUTE_DTYPE), (stride, stride),
        [(padding, padding), (padding, padding)],
        dimension_numbers=("NCHW", "OIHW", "NCHW"),
        preferred_element_type=jnp.float32)
    mean = conv.mean(axis=(0, 2, 3), keepdims=True)
    var = conv.var(axis=(0, 2, 3), keepdims=True)
    norm = (conv - mean) * jax.lax.rsqrt(var + BN_EPS)
    return norm * gamma.reshape(1, -1, 1, 1) + beta.reshape(1, -1, 1, 1)


if __name__ == "__main__":
    key = jax.random.PRNGKey(0)

    # --- test 1: ReLUConvBN(4, 8, kernel_size=1, stride=1, padding=0) -------
    N, C_in, H, W = 2, 4, 16, 16
    C_out, K, S, P = 8, 1, 1, 0
    kx, kw_, kg, kb = jax.random.split(key, 4)
    x = jax.random.normal(kx, (N, C_in, H, W), dtype=jnp.float32)
    weight = 0.1 * jax.random.normal(kw_, (C_out, C_in, K, K), dtype=jnp.float32)
    gamma = 1.0 + 0.1 * jax.random.normal(kg, (C_out,), dtype=jnp.float32)
    beta = 0.1 * jax.random.normal(kb, (C_out,), dtype=jnp.float32)

    out = relu_conv_bn(x, weight, gamma, beta,
                       kernel_size=K, stride=S, padding=P, block_m=128)
    out = jax.block_until_ready(out)
    assert out.shape == (N, C_out, H, W), out.shape

    ref_m = _reference_matched(x, weight, gamma, beta, stride=S, padding=P)
    assert jnp.allclose(out, ref_m, atol=2e-3, rtol=2e-3), float(
        jnp.max(jnp.abs(out - ref_m)))
    ref_f = _reference_f32(x, weight, gamma, beta, stride=S, padding=P)
    # loose check vs pure-f32 math: difference is bf16 MXU operand rounding
    assert jnp.allclose(out, ref_f, atol=0.15), float(
        jnp.max(jnp.abs(out - ref_f)))

    # --- test 2: ReLUConvBN(4, 8, kernel_size=3, stride=1, padding=1) -------
    K2, S2, P2 = 3, 1, 1
    kw2 = jax.random.split(kw_, 1)[0]
    weight2 = 0.1 * jax.random.normal(kw2, (C_out, C_in, K2, K2), dtype=jnp.float32)
    out2 = relu_conv_bn(x, weight2, gamma, beta,
                        kernel_size=K2, stride=S2, padding=P2, block_m=256)
    out2 = jax.block_until_ready(out2)
    assert out2.shape == (N, C_out, H, W), out2.shape
    ref2_m = _reference_matched(x, weight2, gamma, beta, stride=S2, padding=P2)
    assert jnp.allclose(out2, ref2_m, atol=2e-3, rtol=2e-3), float(
        jnp.max(jnp.abs(out2 - ref2_m)))
    ref2_f = _reference_f32(x, weight2, gamma, beta, stride=S2, padding=P2)
    assert jnp.allclose(out2, ref2_f, atol=0.15), float(
        jnp.max(jnp.abs(out2 - ref2_f)))

    print("KERNEL_OK")
</pallas_src>

<mosaic_0001>
module attributes {stable_mosaic.version = 11 : i64} {
  func.func @_bn_apply_kernel(%arg0: i32, %arg1: memref<8x128xf32, #tpu.memory_space<vmem>>, %arg2: memref<8x1xf32, #tpu.memory_space<vmem>>, %arg3: memref<8x1xf32, #tpu.memory_space<vmem>>, %arg4: memref<8x128xf32, #tpu.memory_space<vmem>>) attributes {dimension_semantics = [#tpu.dimension_semantics<parallel>], iteration_bounds = array<i64: 4>, scalar_prefetch = 0 : i64, scratch_operands = 0 : i64, tpu.core_type = #tpu.core_type<tc>, window_params = [{transform_indices = @transform_0, window_bounds = array<i64: 8, 128>}, {pipeline_mode = #tpu.pipeline_mode<synchronous>, transform_indices = @transform_1, window_bounds = array<i64: 8, 1>}, {pipeline_mode = #tpu.pipeline_mode<synchronous>, transform_indices = @transform_2, window_bounds = array<i64: 8, 1>}, {transform_indices = @transform_3, window_bounds = array<i64: 8, 128>}]} {
    %c0 = arith.constant 0 : index
    %c0_0 = arith.constant 0 : index
    %0 = vector.load %arg1[%c0, %c0_0] : memref<8x128xf32, #tpu.memory_space<vmem>>, vector<8x128xf32>
    %c0_1 = arith.constant 0 : index
    %c0_2 = arith.constant 0 : index
    %1 = vector.load %arg2[%c0_1, %c0_2] : memref<8x1xf32, #tpu.memory_space<vmem>>, vector<8x1xf32>
    %2 = vector.broadcast %1 : vector<8x1xf32> to vector<8x128xf32>
    %3 = arith.mulf %0, %2 : vector<8x128xf32>
    %c0_3 = arith.constant 0 : index
    %c0_4 = arith.constant 0 : index
    %4 = vector.load %arg3[%c0_3, %c0_4] : memref<8x1xf32, #tpu.memory_space<vmem>>, vector<8x1xf32>
    %5 = vector.broadcast %4 : vector<8x1xf32> to vector<8x128xf32>
    %6 = arith.addf %3, %5 : vector<8x128xf32>
    %c0_5 = arith.constant 0 : index
    %c0_6 = arith.constant 0 : index
    %7 = vector.load %arg4[%c0_5, %c0_6] : memref<8x128xf32, #tpu.memory_space<vmem>>, vector<8x128xf32>
    tpu.vector_store %arg4[%c0_5, %c0_6], %6 {strides = array<i32>} : memref<8x128xf32, #tpu.memory_space<vmem>>, vector<8x128xf32>,
    return
  }
  func.func @transform_0(%arg0: i32) -> (i32, i32) {
    %c0_i32 = arith.constant 0 : i32
    %c0_i32_0 = arith.constant 0 : i32
    return %c0_i32, %arg0 : i32, i32
  }
  func.func @transform_1(%arg0: i32) -> (i32, i32) {
    %c0_i32 = arith.constant 0 : i32
    %c0_i32_0 = arith.constant 0 : i32
    %c0_i32_1 = arith.constant 0 : i32
    return %c0_i32, %c0_i32_0 : i32, i32
  }
  func.func @transform_2(%arg0: i32) -> (i32, i32) {
    %c0_i32 = arith.constant 0 : i32
    %c0_i32_0 = arith.constant 0 : i32
    %c0_i32_1 = arith.constant 0 : i32
    return %c0_i32, %c0_i32_0 : i32, i32
  }
  func.func @transform_3(%arg0: i32) -> (i32, i32) {
    %c0_i32 = arith.constant 0 : i32
    %c0_i32_0 = arith.constant 0 : i32
    return %c0_i32, %arg0 : i32, i32
  }
}

module attributes {stable_mosaic.version = 11 : i64} {
  func.func @_conv_stats_kernel(%arg0: i32, %arg1: memref<16x128xbf16, #tpu.memory_space<vmem>>, %arg2: memref<8x16xbf16, #tpu.memory_space<vmem>>, %arg3: memref<8x1xf32, #tpu.memory_space<vmem>>, %arg4: memref<8x1xf32, #tpu.memory_space<vmem>>, %arg5: memref<8x128xf32, #tpu.memory_space<vmem>>, %arg6: memref<8x1xf32, #tpu.memory_space<vmem>>, %arg7: memref<8x1xf32, #tpu.memory_space<vmem>>, %arg8: memref<8x1xf32, #tpu.memory_space<vmem>>, %arg9: memref<8x1xf32, #tpu.memory_space<vmem>>) attributes {dimension_semantics = [#tpu.dimension_semantics<arbitrary>], iteration_bounds = array<i64: 4>, scalar_prefetch = 0 : i64, scratch_operands = 2 : i64, tpu.core_type = #tpu.core_type<tc>, window_params = [{transform_indices = @transform_0, window_bounds = array<i64: 16, 128>}, {pipeline_mode = #tpu.pipeline_mode<synchronous>, transform_indices = @transform_1, window_bounds = array<i64: 8, 16>}, {pipeline_mode = #tpu.pipeline_mode<synchronous>, transform_indices = @transform_2, window_bounds = array<i64: 8, 1>}, {pipeline_mode = #tpu.pipeline_mode<synchronous>, transform_indices = @transform_3, window_bounds = array<i64: 8, 1>}, {transform_indices = @transform_4, window_bounds = array<i64: 8, 128>}, {pipeline_mode = #tpu.pipeline_mode<synchronous>, transform_indices = @transform_5, window_bounds = array<i64: 8, 1>}, {pipeline_mode = #tpu.pipeline_mode<synchronous>, transform_indices = @transform_6, window_bounds = array<i64: 8, 1>}]} {
    %c0_i32 = arith.constant 0 : i32
    %0 = arith.cmpi eq, %arg0, %c0_i32 : i32
    %1 = arith.extui %0 : i1 to i32
    %c0_i32_0 = arith.constant 0 : i32
    %2 = arith.cmpi ne, %1, %c0_i32_0 : i32
    scf.if %2 {
      %cst_18 = arith.constant 0.000000e+00 : f32
      %23 = vector.broadcast %cst_18 : f32 to vector<8x1xf32>
      %c0_19 = arith.constant 0 : index
      %c0_20 = arith.constant 0 : index
      %24 = vector.load %arg8[%c0_19, %c0_20] : memref<8x1xf32, #tpu.memory_space<vmem>>, vector<8x1xf32>
      tpu.vector_store %arg8[%c0_19, %c0_20], %23 {strides = array<i32>} : memref<8x1xf32, #tpu.memory_space<vmem>>, vector<8x1xf32>,
      %cst_21 = arith.constant 0.000000e+00 : f32
      %25 = vector.broadcast %cst_21 : f32 to vector<8x1xf32>
      %c0_22 = arith.constant 0 : index
      %c0_23 = arith.constant 0 : index
      %26 = vector.load %arg9[%c0_22, %c0_23] : memref<8x1xf32, #tpu.memory_space<vmem>>, vector<8x1xf32>
      tpu.vector_store %arg9[%c0_22, %c0_23], %25 {strides = array<i32>} : memref<8x1xf32, #tpu.memory_space<vmem>>, vector<8x1xf32>,
    } else {
    }
    %c0 = arith.constant 0 : index
    %c0_1 = arith.constant 0 : index
    %3 = vector.load %arg1[%c0, %c0_1] : memref<16x128xbf16, #tpu.memory_space<vmem>>, vector<16x128xbf16>
    %cst = arith.constant 0.000000e+00 : bf16
    %4 = vector.broadcast %cst : bf16 to vector<16x128xbf16>
    %5 = arith.maximumf %3, %4 : vector<16x128xbf16>
    %c0_2 = arith.constant 0 : index
    %c0_3 = arith.constant 0 : index
    %6 = vector.load %arg2[%c0_2, %c0_3] : memref<8x16xbf16, #tpu.memory_space<vmem>>, vector<8x16xbf16>
    %cst_4 = arith.constant dense<0.000000e+00> : vector<8x128xf32>
    %7 = tpu.matmul %6, %5, %cst_4 {dimension_numbers = #tpu.dot_dimension_numbers<[1], [0], [0], [1], [0, 0, 1, 1], [], []>} : vector<8x16xbf16>, vector<16x128xbf16>, vector<8x128xf32> -> vector<8x128xf32>
    %c0_5 = arith.constant 0 : index
    %c0_6 = arith.constant 0 : index
    %8 = vector.load %arg5[%c0_5, %c0_6] : memref<8x128xf32, #tpu.memory_space<vmem>>, vector<8x128xf32>
    tpu.vector_store %arg5[%c0_5, %c0_6], %7 {strides = array<i32>} : memref<8x128xf32, #tpu.memory_space<vmem>>, vector<8x128xf32>,
    %c0_7 = arith.constant 0 : index
    %c0_8 = arith.constant 0 : index
    %9 = vector.load %arg8[%c0_7, %c0_8] : memref<8x1xf32, #tpu.memory_space<vmem>>, vector<8x1xf32>
    %cst_9 = arith.constant dense<0.000000e+00> : vector<8xf32>
    %10 = vector.multi_reduction <add>, %7, %cst_9 [1] : vector<8x128xf32> to vector<8xf32>
    %11 = vector.shape_cast %10 : vector<8xf32> to vector<8x1xf32>
    %12 = arith.addf %9, %11 : vector<8x1xf32>
    %c0_10 = arith.constant 0 : index
    %c0_11 = arith.constant 0 : index
    %13 = vector.load %arg8[%c0_10, %c0_11] : memref<8x1xf32, #tpu.memory_space<vmem>>, vector<8x1xf32>
    tpu.vector_store %arg8[%c0_10, %c0_11], %12 {strides = array<i32>} : memref<8x1xf32, #tpu.memory_space<vmem>>, vector<8x1xf32>,
    %c0_12 = arith.constant 0 : index
    %c0_13 = arith.constant 0 : index
    %14 = vector.load %arg9[%c0_12, %c0_13] : memref<8x1xf32, #tpu.memory_space<vmem>>, vector<8x1xf32>
    %15 = arith.mulf %7, %7 : vector<8x128xf32>
    %cst_14 = arith.constant dense<0.000000e+00> : vector<8xf32>
    %16 = vector.multi_reduction <add>, %15, %cst_14 [1] : vector<8x128xf32> to vector<8xf32>
    %17 = vector.shape_cast %16 : vector<8xf32> to vector<8x1xf32>
    %18 = arith.addf %14, %17 : vector<8x1xf32>
    %c0_15 = arith.constant 0 : index
    %c0_16 = arith.constant 0 : index
    %19 = vector.load %arg9[%c0_15, %c0_16] : memref<8x1xf32, #tpu.memory_space<vmem>>, vector<8x1xf32>
    tpu.vector_store %arg9[%c0_15, %c0_16], %18 {strides = array<i32>} : memref<8x1xf32, #tpu.memory_space<vmem>>, vector<8x1xf32>,
    %c3_i32 = arith.constant 3 : i32
    %20 = arith.cmpi eq, %arg0, %c3_i32 : i32
    %21 = arith.extui %20 : i1 to i32
    %c0_i32_17 = arith.constant 0 : i32
    %22 = arith.cmpi ne, %21, %c0_i32_17 : i32
    scf.if %22 {
      %c0_18 = arith.constant 0 : index
      %c0_19 = arith.constant 0 : index
      %23 = vector.load %arg8[%c0_18, %c0_19] : memref<8x1xf32, #tpu.memory_space<vmem>>, vector<8x1xf32>
      %cst_20 = arith.constant 0.001953125 : f32
      %24 = vector.broadcast %cst_20 : f32 to vector<8x1xf32>
      %25 = arith.mulf %23, %24 : vector<8x1xf32>
      %c0_21 = arith.constant 0 : index
      %c0_22 = arith.constant 0 : index
      %26 = vector.load %arg9[%c0_21, %c0_22] : memref<8x1xf32, #tpu.memory_space<vmem>>, vector<8x1xf32>
      %cst_23 = arith.constant 0.001953125 : f32
      %27 = vector.broadcast %cst_23 : f32 to vector<8x1xf32>
      %28 = arith.mulf %26, %27 : vector<8x1xf32>
      %29 = arith.mulf %25, %25 : vector<8x1xf32>
      %30 = arith.subf %28, %29 : vector<8x1xf32>
      %cst_24 = arith.constant 0.000000e+00 : f32
      %31 = vector.broadcast %cst_24 : f32 to vector<8x1xf32>
      %32 = arith.maximumf %30, %31 : vector<8x1xf32>
      %cst_25 = arith.constant 9.99999974E-6 : f32
      %33 = vector.broadcast %cst_25 : f32 to vector<8x1xf32>
      %34 = arith.addf %32, %33 : vector<8x1xf32>
      %35 = math.rsqrt %34 : vector<8x1xf32>
      %c0_26 = arith.constant 0 : index
      %c0_27 = arith.constant 0 : index
      %36 = vector.load %arg3[%c0_26, %c0_27] : memref<8x1xf32, #tpu.memory_space<vmem>>, vector<8x1xf32>
      %37 = arith.mulf %36, %35 : vector<8x1xf32>
      %c0_28 = arith.constant 0 : index
      %c0_29 = arith.constant 0 : index
      %38 = vector.load %arg4[%c0_28, %c0_29] : memref<8x1xf32, #tpu.memory_space<vmem>>, vector<8x1xf32>
      %39 = arith.mulf %25, %37 : vector<8x1xf32>
      %40 = arith.subf %38, %39 : vector<8x1xf32>
      %c0_30 = arith.constant 0 : index
      %c0_31 = arith.constant 0 : index
      %41 = vector.load %arg6[%c0_30, %c0_31] : memref<8x1xf32, #tpu.memory_space<vmem>>, vector<8x1xf32>
      tpu.vector_store %arg6[%c0_30, %c0_31], %37 {strides = array<i32>} : memref<8x1xf32, #tpu.memory_space<vmem>>, vector<8x1xf32>,
      %c0_32 = arith.constant 0 : index
      %c0_33 = arith.constant 0 : index
      %42 = vector.load %arg7[%c0_32, %c0_33] : memref<8x1xf32, #tpu.memory_space<vmem>>, vector<8x1xf32>
      tpu.vector_store %arg7[%c0_32, %c0_33], %40 {strides = array<i32>} : memref<8x1xf32, #tpu.memory_space<vmem>>, vector<8x1xf32>,
    } else {
    }
    return
  }
  func.func @transform_0(%arg0: i32) -> (i32, i32) {
    %c0_i32 = arith.constant 0 : i32
    %c0_i32_0 = arith.constant 0 : i32
    return %c0_i32, %arg0 : i32, i32
  }
  func.func @transform_1(%arg0: i32) -> (i32, i32) {
    %c0_i32 = arith.constant 0 : i32
    %c0_i32_0 = arith.constant 0 : i32
    %c0_i32_1 = arith.constant 0 : i32
    return %c0_i32, %c0_i32_0 : i32, i32
  }
  func.func @transform_2(%arg0: i32) -> (i32, i32) {
    %c0_i32 = arith.constant 0 : i32
    %c0_i32_0 = arith.constant 0 : i32
    %c0_i32_1 = arith.constant 0 : i32
    return %c0_i32, %c0_i32_0 : i32, i32
  }
  func.func @transform_3(%arg0: i32) -> (i32, i32) {
    %c0_i32 = arith.constant 0 : i32
    %c0_i32_0 = arith.constant 0 : i32
    %c0_i32_1 = arith.constant 0 : i32
    return %c0_i32, %c0_i32_0 : i32, i32
  }
  func.func @transform_4(%arg0: i32) -> (i32, i32) {
    %c0_i32 = arith.constant 0 : i32
    %c0_i32_0 = arith.constant 0 : i32
    return %c0_i32, %arg0 : i32, i32
  }
  func.func @transform_5(%arg0: i32) -> (i32, i32) {
    %c0_i32 = arith.constant 0 : i32
    %c0_i32_0 = arith.constant 0 : i32
    %c0_i32_1 = arith.constant 0 : i32
    return %c0_i32, %c0_i32_0 : i32, i32
  }
  func.func @transform_6(%arg0: i32) -> (i32, i32) {
    %c0_i32 = arith.constant 0 : i32
    %c0_i32_0 = arith.constant 0 : i32
    %c0_i32_1 = arith.constant 0 : i32
    return %c0_i32, %c0_i32_0 : i32, i32
  }
}

</mosaic_0001>

<bundles_post_ra>
// kernel: relu_conv_bn.3
= control target key start
LH: loop header
LB: loop body
LE: loop exit
PB: predicated region body
PF: predicated region fallthrough
CT: control target
= control target key end

     0   :  { %s283_s12 = smov 0   ;;  %s300_s0 = inlined_call_operand.vmem [shape: f32[8,512], index: 0, kind: input, shape index: {}]   ;;  %s301_s1 = inlined_call_operand.vmem [shape: f32[8,1], index: 1, kind: input, shape index: {}]   ;;  %s302_s2 = inlined_call_operand.vmem [shape: f32[8,1], index: 2, kind: input, shape index: {}]   ;;  %s303_s3 = inlined_call_operand.vmem [shape: f32[8,512], index: 3, kind: output, shape index: {}]  }
   0x1 LB: > { %s235_s13 = sadd.s32 4294967295, %s260_s12   ;;  %p239_p0 = scmp.ge.s32.totalorder %s260_s12, 1  ;;  %s260_s12 = sphi %s283_s12, %s13_s12  }
   0x2   : > { %p136_p1 = scmp.lt.s32.totalorder %s260_s12, 5 }
   0x4   : > { %p137_p2 = pnand %p239_p0, %p136_p1 }
   0x5   : > { %p158_p3 = scmp.lt.s32.totalorder (!%p137_p2), %s235_s13, 3 }
   0x6   : > { %140 = sbr.rel (%p137_p2) target bundleno = 144 (0x90), region = 32 }
   0xb   : > { %v167_v0 = vld [vmem:[%s301_s1] sm:$0xff]  ;;  %v262_v1 = vmov 0   ;;  %s305_s13 = smov (!%p158_p3, %s235_s13), 3 }
   0xc   : > { %253 = vset.pattern.permute.xlu0 %v262_v1  ;;  %v174_v2 = vld [vmem:[%s302_s2] sm:$0xff]  ;;  %s240_s18 = sshll.u32 %s305_s13, 3 }
   0xd   : > { %170 = vperm.xlu0 %253, %v167_v0   ;;  %s161_s21 = scalar_lea.vmem %s300_s0, %s240_s18  ;;  %s165_s24 = scalar_lea.vmem %s303_s3, %s240_s18 }
   0xe   : > { %v166_v4 = vld [vmem:[%s161_s21] sm:$0xff] }
  0x11   : > { %177 = vperm.xlu0 %253, %v174_v2  }
  0x88   : > { %v171_v3 = vpop.permute.xlu0 %170 }
  0x89   : > { %v173_v5 = vmul.f32 %v171_v3, %v166_v4 }
  0x8c   : > { %v178_v6 = vpop.permute.xlu0 %177 }
  0x8d   : > { %v180_v7 = vadd.f32 %v178_v6, %v173_v5 }
  0x8f   : > { %181 = vst [vmem:[%s165_s24] sm:$0xff] %v180_v7 }
  0x90 PF: > { %s13_s12 = sadd.s32 1, %s260_s12  }
  0x91   : > { %p10_p4 = scmp.ge.s32.totalorder %s13_s12, 6  }
  0x93   :  { %12 = sbr.rel (!%p10_p4) target bundleno = 1 (0x1), region = 62 }

// kernel: relu_conv_bn.2
= control target key start
LH: loop header
LB: loop body
LE: loop exit
PB: predicated region body
PF: predicated region fallthrough
CT: control target
= control target key end

     0   :  { %s575_s21 = smov 0   ;;  %s577_s22 = smov 0   ;;  %s640_s0 = inlined_call_operand.vmem [shape: bf16[16,512], index: 0, kind: input, shape index: {}]   ;;  %s641_s1 = inlined_call_operand.vmem [shape: bf16[8,16], index: 1, kind: input, shape index: {}]   ;;  %s642_s2 = inlined_call_operand.vmem [shape: f32[8,1], index: 2, kind: input, shape index: {}]   ;;  %s643_s3 = inlined_call_operand.vmem [shape: f32[8,1], index: 3, kind: input, shape index: {}]   ;;  %s644_s4 = inlined_call_operand.vmem [shape: f32[8,512], index: 4, kind: output, shape index: {0}]   ;;  %s645_s5 = inlined_call_operand.vmem [shape: f32[8,1], index: 5, kind: output, shape index: {1}]   ;;  %s646_s6 = inlined_call_operand.vmem [shape: f32[8,1], index: 6, kind: output, shape index: {2}]  }
   0x1   :  { %s579_s23 = smov 0  }
   0x2 LB: > { %s588_s24 = sadd.s32 4294967295, %s534_s23   ;;  %s590_s25 = sadd.s32 1, %s534_s23   ;;  %s534_s23 = sphi %s579_s23, %s649_s23   ;;  %s530_s22 = sphi %s577_s22, %s648_s22   ;;  %s526_s21 = sphi %s575_s21, %s647_s21  }
   0x3   : > { %s21_s26 = ssub.s32 %s534_s23, %s590_s25  ;;  %s24_s27 = sadd.s32 1, %s530_s22 }
   0x4   : > { %p22_p0 = scmp.eq.s32.totalorder %s21_s26, 0  ;;  %p31_p1 = scmp.ne.s32.totalorder %s530_s22, %s526_s21 }
   0x5   : > { %p32_p2 = scmp.eq.s32.totalorder %s534_s23, 0  ;;  %p462_p4 = scmp.ge.s32.totalorder %s534_s23, 4 }
   0x6   : > { %s597_s28 = scalar_select %p22_p0, %s530_s22, %s24_s27  }
   0x7   : > { %p33_p3 = por %p32_p2, %p31_p1  ;;  %197 = sbr.rel (%p462_p4) target bundleno = 17 (0x11), region = 28 }
   0xc   : > { %200 = sbr.rel (!%p33_p3) target bundleno = 17 (0x11), region = 32  ;;  %s202_s29 = sand.u32 (%p33_p3), 1, %s530_s22  }
   0xd   : > { %s464_s30 = sshll.u32 (%p33_p3), %s534_s23, 2  ;;  %s463_s7 = sshll.u32 (%p33_p3), %s202_s29, 3 }
   0xe   : > { %s206_s10 = scalar_lea.vmem (%p33_p3), %s640_s0, %s464_s30  ;;  %s204_s11 = scalar_lea.vmem (%p33_p3), [#allocation4], %s463_s7 }
   0xf   : > { %v223_v0 = vld [vmem:[%s206_s10] sm:$0xf] (%p33_p3)  ;;  %v225_v1 = vld [vmem:[%s206_s10 + $0x10] sm:$0xf] (%p33_p3) }
  0x10   : > { %224 = vst [vmem:[%s204_s11] sm:$0xf] (%p33_p3), %v223_v0  ;;  %226 = vst [vmem:[%s204_s11 + $0x4] sm:$0xf] (%p33_p3), %v225_v1 }
  0x11 PF: > { %p465_p5 = scmp.ge.s32.totalorder %s534_s23, 1  ;;  %p253_p6 = scmp.lt.s32.totalorder %s534_s23, 5 }
  0x13   : > { %p254_p7 = pnand %p465_p5, %p253_p6 }
  0x14   : > { %s260_s12 = sand.u32 (!%p254_p7), 1, %s526_s21   ;;  %p288_p8 = scmp.lt.s32.totalorder (!%p254_p7), %s588_s24, 3 }
  0x15   : > { %257 = sbr.rel (%p254_p7) target bundleno = 416 (0x1a0), region = 73  ;;  %s466_s13 = sshll.u32 (!%p254_p7), %s260_s12, 3 }
  0x16   : > { %s262_s19 = scalar_lea.vmem (!%p254_p7), [#allocation4], %s466_s13  ;;  %p468_p9 = scmp.ne.s32.totalorder (!%p254_p7), %s588_s24, 0 }
  0x1a   : > { %s289_s14 = scalar_select %p288_p8, %s588_s24, 3 }
  0x1b   : > { %296 = sbr.rel (%p468_p9) target bundleno = 34 (0x22), region = 81 }
  0x1c   : > { %s467_s15 = sshll.u32 %s289_s14, 3 }
  0x1d   : > { %s291_s18 = scalar_lea.vmem %s644_s4, %s467_s15 }
  0x20   : > { %vm297_vm0 = vcmask 7168   ;;  %v536_v2 = vmov 0.0  }
  0x21   : > { %298 = vst.msk [vmem:[#allocation2] sm:$0xff] %vm297_vm0, %v536_v2  ;;  %299 = vst.msk [vmem:[#allocation3] sm:$0xff] %vm297_vm0, %v536_v2 }
  0x22 PF: > { %v300_v3 = vld [vmem:[%s262_s19] sm:$0xf]  ;;  %v301_v4 = vld [vmem:[%s262_s19 + $0x4] sm:$0xf]  ;;  %v537_v5 = vmov 0.0   ;;  %v538_v6 = vmov 0  }
  0x23   : > { %476 = vmatprep.subr.bf16.mxu0 %v537_v5  ;;  %v302_v7 = vmax.bf16 %v538_v6, %v300_v3  ;;  %v303_v8 = vmax.bf16 %v538_v6, %v301_v4  ;;  %vm539_vm1 = vmmov 0   ;;  %v304_v10 = vld [vmem:[%s641_s1] sm:$0xf]  ;;  %vm311_vm2 = vcmask 130048   ;;  %p471_p10 = scmp.ne.s32.totalorder %s588_s24, 3 }
  0x24   : > { %478 = vmatprep.mubr.msk.bf16.mxu0 %vm539_vm1, %v537_v5  ;;  %vm360_vm3 = vcmask 7168  }
  0x25   : > { %v469_v9 = vcombine.low %v302_v7, %v303_v8 }
  0x27   : > { %477 = vmatpush3.bf16.msra.mxu0 %v469_v9 }
  0x28   : > { %v356_v16 = vld [vmem:[#allocation2] sm:$0xff]  ;;  %v362_v19 = vld [vmem:[#allocation3] sm:$0xff] }
  0x2a   : > { %479 = vmatmul.mubr.msk.bf16.vlgmr.msra.gmra.mxu0 %vm311_vm2, %v304_v10 }
  0xea   : > { %v349_v11 = vpop.f32.mrf.mxu0 }
  0xeb   : > { %355 = vst [vmem:[%s291_s18] sm:$0xff] %v349_v11  ;;  %357 = vadd.xlane.f32.xlu0 %v349_v11  ;;  %v363_v13 = vmul.f32 %v349_v11, %v349_v11 }
  0xec   : > { %v480_v12 = vpop.f32.mrf.mxu0 }
  0xee   : > { %v352_v14 = vpop.f32.mrf.mxu0 }
  0xef   : > { %364 = vadd.xlane.f32.xlu0 %v363_v13 }
  0xf0   : > { %v481_v15 = vpop.f32.mrf.mxu0 }
 0x174   : > { %v358_v17 = vpop.xlane.xlu0 %357 }
 0x175   : > { %v359_v18 = vadd.f32 %v358_v17, %v356_v16 }
 0x177   : > { %361 = vst.msk [vmem:[#allocation2] sm:$0xff] %vm360_vm3, %v359_v18  ;;  %371 = sbr.rel (%p471_p10) target bundleno = 416 (0x1a0), region = 85 }
 0x178   : > { %v365_v20 = vpop.xlane.xlu0 %364 }
 0x179   : > { %v366_v21 = vadd.f32 %v365_v20, %v362_v19 }
 0x17b   : > { %367 = vst.msk [vmem:[#allocation3] sm:$0xff] %vm360_vm3, %v366_v21 }
 0x17c   : > { %v381_v30 = vld [vmem:[%s642_s2] sm:$0xff] }
 0x17d   : > { %v383_v33 = vld [vmem:[%s643_s3] sm:$0xff] }
 0x17e   : > { %v372_v22 = vld [vmem:[#allocation2] sm:$0xff] }
 0x17f   : > { %v373_v24 = vmul.f32 0.001953125, %v372_v22 }
 0x181   : > { %v376_v26 = vmul.f32 %v373_v24, %v373_v24 }
 0x182   : > { %v374_v23 = vld [vmem:[#allocation3] sm:$0xff] }
 0x183   : > { %v375_v25 = vmul.f32 0.001953125, %v374_v23 }
 0x185   : > { %v377_v27 = vsub.f32 %v375_v25, %v376_v26 }
 0x187   : > { %v378_v28 = vmax.f32 %v377_v27, 0.0 }
 0x189   : > { %v379_v29 = vadd.f32 1e-05, %v378_v28 }
 0x18b   : > { %510 = vrsqrt.f32 %v379_v29 }
 0x198   : > { %v511_v31 = vpop.eup %510 }
 0x199   : > { %v382_v32 = vmul.f32 %v511_v31, %v381_v30 }
 0x19b   : > { %386 = vst.msk [vmem:[%s645_s5] sm:$0xff] %vm360_vm3, %v382_v32  ;;  %v384_v34 = vmul.f32 %v382_v32, %v373_v24 }
 0x19d   : > { %v385_v35 = vsub.f32 %v383_v33, %v384_v34 }
 0x19f   : > { %387 = vst.msk [vmem:[%s646_s6] sm:$0xff] %vm360_vm3, %v385_v35 }
 0x1a0 PF: > { %p14_p11 = scmp.ge.s32.totalorder %s590_s25, 6   ;;  %s647_s21 = smov %s530_s22 }
 0x1a1   : > { %s648_s22 = smov %s597_s28  ;;  %s649_s23 = smov %s590_s25 }
 0x1a2   :  { %16 = sbr.rel (!%p14_p11) target bundleno = 2 (0x2), region = 136 }

</bundles_post_ra>
